<compile_context>
chip_gen: v7x
topology: tpu7x:2x2x1
jax: 0.10.0
libtpu: 0.0.40
codegen_flags: <defaults>
</compile_context>

<pallas_src>
import functools
import math

import jax
import jax.numpy as jnp
from jax.experimental import pallas as pl
from jax.experimental.pallas import tpu as pltpu


def _round_up(x, m):
    return ((x + m - 1) // m) * m


def _vmem_cap_bytes():
    # v7x has 64 MiB VMEM / TensorCore (vs 128 MiB on v5e/v6e).
    try:
        phys = pltpu.get_tpu_info().vmem_capacity_bytes
    except Exception:
        phys = 128 << 20
    return (48 << 20) if phys <= (64 << 20) else (96 << 20)


# ----------------------------------------------------------------------------
# Kernel: one batch tile per grid step; folded params stay resident in VMEM.
# ----------------------------------------------------------------------------
def _lbm_forward_kernel(x_ref, c_ref, evar_ref, out_ref, *, dim_y):
    x = x_ref[...]                                   # (tn, dx), compute dtype
    # Single MXU push:  r = x @ [A | M], f32 accumulation.
    r = jnp.dot(x, c_ref[...],
                preferred_element_type=jnp.float32)  # (tn, dy+dx) f32
    mu = r[:, :dim_y]                                # (tn, dy)
    t = r[:, dim_y:]                                 # (tn, dx) = x @ M

    # Elementwise work in f32 on every chip generation (v5e VPU has no bf16).
    x_f32 = x.astype(jnp.float32)
    vars_pred_in = jnp.sum(t * x_f32, axis=-1, keepdims=True) + 1.0   # (tn, 1)
    cov_diag = vars_pred_in * evar_ref[...]          # (tn, dy) f32

    # Fused lane-contiguous output: [ mu | cov_diag ].
    out_ref[...] = jnp.concatenate([mu, cov_diag], axis=-1).astype(out_ref.dtype)


# ----------------------------------------------------------------------------
# Wrapper: parameter transforms + feature-map fold (tiny) in plain JAX,
# hot path (everything O(n)) in Pallas.
# ----------------------------------------------------------------------------
def lbm_forward(x, w_feat, post_mean, post_cov_in_chol, error_vars_out_sqrt,
                *, compute_dtype=jnp.float32, tile_n=None):
    n, dim_x = x.shape
    dim_features, dim_y = post_mean.shape
    assert w_feat.shape == (dim_x, dim_features)

    # post_cov_in = L @ L^T, L = tril(chol, -1) + diag(softplus(diag(chol)))
    diag_sp = jax.nn.softplus(jnp.diag(post_cov_in_chol))
    lower = jnp.tril(post_cov_in_chol, k=-1) + jnp.diag(diag_sp)
    post_cov_in = (lower @ lower.T).astype(jnp.float32)            # (F, F)

    # TODO(synk): `self.features` is an abstract nn.Module in the torch base
    # class; a deterministic *linear* map x @ w_feat is used as stand-in and is
    # folded into the posterior below.  For a nonlinear features(), compute phi
    # outside and call this with w_feat = identity.
    w32 = w_feat.astype(jnp.float32)
    A = w32 @ post_mean.astype(jnp.float32)                        # (dx, dy)
    M = w32 @ post_cov_in @ w32.T                                  # (dx, dx)
    C = jnp.concatenate([A, M], axis=1).astype(compute_dtype)      # (dx, dy+dx)
    error_vars = (error_vars_out_sqrt.astype(jnp.float32) ** 2).reshape(1, dim_y)

    x_in = x.astype(compute_dtype)          # bf16 path: halve x HBM bytes
    in_itemsize = jnp.dtype(compute_dtype).itemsize

    # ---- tile size from actual per-row bytes and generation-aware VMEM cap --
    vmem_cap = _vmem_cap_bytes()
    stream_row = in_itemsize * dim_x + 4 * 2 * dim_y          # x row + fused out row
    interm_row = 4 * (2 * dim_x + 2 * dim_y + 1)              # r, x_f32, vars, cov_diag
    param_bytes = in_itemsize * dim_x * (dim_y + dim_x) + 4 * dim_y
    if tile_n is None:
        budget = vmem_cap - 2 * param_bytes - (8 << 20)       # generous margin
        tile_n = budget // (2 * stream_row + interm_row)      # double-buffered streams
        tile_n = int(max(256, min(tile_n, 4096)))
    tile_n = int(min(tile_n, _round_up(n, 8)))
    tile_n = _round_up(tile_n, 8)
    grid = (pl.cdiv(n, tile_n),)

    vmem_need = (2 * tile_n * stream_row + tile_n * interm_row
                 + 2 * param_bytes + (4 << 20))
    vmem_limit = int(min(max(vmem_need, 32 << 20), vmem_cap))

    flops = n * (2 * dim_x * (dim_y + dim_x) + 2 * dim_x + 2 * dim_y)
    bytes_accessed = (in_itemsize * (n * dim_x + dim_x * (dim_y + dim_x))
                      + 4 * (dim_y + 2 * n * dim_y))

    fused = pl.pallas_call(
        functools.partial(_lbm_forward_kernel, dim_y=dim_y),
        out_shape=jax.ShapeDtypeStruct((n, 2 * dim_y), jnp.float32),
        grid=grid,
        in_specs=[
            pl.BlockSpec((tile_n, dim_x), lambda i: (i, 0)),            # x (streamed)
            pl.BlockSpec((dim_x, dim_y + dim_x), lambda i: (0, 0)),     # [A | M] (resident)
            pl.BlockSpec((1, dim_y), lambda i: (0, 0)),                 # error vars
        ],
        out_specs=pl.BlockSpec((tile_n, 2 * dim_y), lambda i: (i, 0)),  # [mu | cov_diag]
        compiler_params=pltpu.CompilerParams(
            dimension_semantics=("parallel",),
            vmem_limit_bytes=vmem_limit),
        cost_estimate=pl.CostEstimate(flops=flops, transcendentals=0,
                                      bytes_accessed=bytes_accessed),
    )(x_in, C, error_vars)

    mu = fused[:, :dim_y]
    cov_diag = fused[:, dim_y:]
    # Dense (n, dy, dy) covariance (module return contract): expand the diagonal
    # outside the kernel so the kernel never writes dy^2 mostly-zero floats/row.
    cov_pred = cov_diag[:, :, None] * jnp.eye(dim_y, dtype=cov_diag.dtype)[None]
    return mu, cov_pred


# ----------------------------------------------------------------------------
# Pure-JAX reference for correctness checks.
# ----------------------------------------------------------------------------
def lbm_forward_ref(x, w_feat, post_mean, post_cov_in_chol, error_vars_out_sqrt):
    diag_sp = jax.nn.softplus(jnp.diag(post_cov_in_chol))
    lower = jnp.tril(post_cov_in_chol, k=-1) + jnp.diag(diag_sp)
    post_cov_in = lower @ lower.T
    error_cov_out = jnp.diag(error_vars_out_sqrt ** 2)

    phi = x @ w_feat
    mu = phi @ post_mean
    vars_feat = jnp.einsum('nf,fg,ng->n', phi, post_cov_in, phi)
    vars_pred_in = vars_feat + 1.0
    cov_pred = vars_pred_in[:, None, None] * error_cov_out[None, :, :]
    return mu, cov_pred


if __name__ == "__main__":
    # Small shapes consistent with the module: n samples of dim_x, mapped to
    # dim_features features, predicting dim_y outputs.
    n, dim_x, dim_features, dim_y = 16, 8, 32, 4

    key = jax.random.PRNGKey(0)
    k_x, k_wf, k_pm, k_chol, k_ev, k_x2 = jax.random.split(key, 6)

    x = jax.random.normal(k_x, (n, dim_x), dtype=jnp.float32)
    w_feat = jax.random.normal(k_wf, (dim_x, dim_features),
                               dtype=jnp.float32) / math.sqrt(dim_x)
    post_mean = 0.1 * jax.random.normal(k_pm, (dim_features, dim_y),
                                        dtype=jnp.float32)
    post_cov_in_chol = (jnp.eye(dim_features, dtype=jnp.float32)
                        + 0.05 * jax.random.normal(
                            k_chol, (dim_features, dim_features),
                            dtype=jnp.float32))
    error_vars_out_sqrt = (0.01 * jnp.ones((dim_y,), dtype=jnp.float32)
                           + 0.001 * jax.random.normal(k_ev, (dim_y,),
                                                       dtype=jnp.float32))

    # --- f32 path (default), single tile ---
    mu, cov_pred = lbm_forward(x, w_feat, post_mean, post_cov_in_chol,
                               error_vars_out_sqrt)
    jax.block_until_ready((mu, cov_pred))
    mu_ref, cov_ref = lbm_forward_ref(x, w_feat, post_mean, post_cov_in_chol,
                                      error_vars_out_sqrt)
    assert mu.shape == (n, dim_y)
    assert cov_pred.shape == (n, dim_y, dim_y)
    assert jnp.allclose(mu, mu_ref, atol=1e-5, rtol=1e-5)
    assert jnp.allclose(cov_pred, cov_ref, atol=1e-6, rtol=1e-4)

    # --- multi-tile grid path (exercises batch tiling / pipelining) ---
    n2 = 64
    x2 = jax.random.normal(k_x2, (n2, dim_x), dtype=jnp.float32)
    mu2, cov2 = lbm_forward(x2, w_feat, post_mean, post_cov_in_chol,
                            error_vars_out_sqrt, tile_n=16)   # grid = (4,)
    jax.block_until_ready((mu2, cov2))
    mu2_ref, cov2_ref = lbm_forward_ref(x2, w_feat, post_mean, post_cov_in_chol,
                                        error_vars_out_sqrt)
    assert jnp.allclose(mu2, mu2_ref, atol=1e-5, rtol=1e-5)
    assert jnp.allclose(cov2, cov2_ref, atol=1e-6, rtol=1e-4)

    # --- bf16 MXU/HBM path (v6e/v7x throughput option), f32 elementwise ---
    mu_bf, cov_bf = lbm_forward(x, w_feat, post_mean, post_cov_in_chol,
                                error_vars_out_sqrt,
                                compute_dtype=jnp.bfloat16)
    jax.block_until_ready((mu_bf, cov_bf))
    assert jnp.allclose(mu_bf, mu_ref, atol=5e-2, rtol=5e-2)
    assert jnp.allclose(cov_bf, cov_ref, atol=1e-3, rtol=5e-2)

    print("KERNEL_OK")
</pallas_src>

<mosaic_0001>
module attributes {stable_mosaic.version = 11 : i64} {
  func.func @_lbm_forward_kernel(%arg0: i32, %arg1: memref<16x8xf32, #tpu.memory_space<vmem>>, %arg2: memref<8x12xf32, #tpu.memory_space<vmem>>, %arg3: memref<1x4xf32, #tpu.memory_space<vmem>>, %arg4: memref<16x8xf32, #tpu.memory_space<vmem>>) attributes {dimension_semantics = [#tpu.dimension_semantics<parallel>], iteration_bounds = array<i64: 1>, scalar_prefetch = 0 : i64, scratch_operands = 0 : i64, tpu.core_type = #tpu.core_type<tc>, window_params = [{transform_indices = @transform_0, window_bounds = array<i64: 16, 8>}, {pipeline_mode = #tpu.pipeline_mode<synchronous>, transform_indices = @transform_1, window_bounds = array<i64: 8, 12>}, {pipeline_mode = #tpu.pipeline_mode<synchronous>, transform_indices = @transform_2, window_bounds = array<i64: 1, 4>}, {transform_indices = @transform_3, window_bounds = array<i64: 16, 8>}]} {
    %c0 = arith.constant 0 : index
    %c0_0 = arith.constant 0 : index
    %0 = vector.load %arg1[%c0, %c0_0] : memref<16x8xf32, #tpu.memory_space<vmem>>, vector<16x8xf32>
    %c0_1 = arith.constant 0 : index
    %c0_2 = arith.constant 0 : index
    %1 = vector.load %arg2[%c0_1, %c0_2] : memref<8x12xf32, #tpu.memory_space<vmem>>, vector<8x12xf32>
    %cst = arith.constant dense<0.000000e+00> : vector<16x12xf32>
    %2 = tpu.matmul %0, %1, %cst {dimension_numbers = #tpu.dot_dimension_numbers<[1], [0], [0], [1], [0, 0, 1, 1], [], []>} : vector<16x8xf32>, vector<8x12xf32>, vector<16x12xf32> -> vector<16x12xf32>
    %3 = vector.extract_strided_slice %2 {offsets = [0, 0], sizes = [16, 4], strides = [1, 1]} : vector<16x12xf32> to vector<16x4xf32>
    %4 = vector.extract_strided_slice %2 {offsets = [0, 4], sizes = [16, 8], strides = [1, 1]} : vector<16x12xf32> to vector<16x8xf32>
    %5 = arith.mulf %4, %0 : vector<16x8xf32>
    %cst_3 = arith.constant dense<0.000000e+00> : vector<16xf32>
    %6 = vector.multi_reduction <add>, %5, %cst_3 [1] : vector<16x8xf32> to vector<16xf32>
    %7 = vector.shape_cast %6 : vector<16xf32> to vector<16x1xf32>
    %cst_4 = arith.constant 1.000000e+00 : f32
    %8 = vector.broadcast %cst_4 : f32 to vector<16x1xf32>
    %9 = arith.addf %7, %8 : vector<16x1xf32>
    %c0_5 = arith.constant 0 : index
    %c0_6 = arith.constant 0 : index
    %10 = vector.load %arg3[%c0_5, %c0_6] : memref<1x4xf32, #tpu.memory_space<vmem>>, vector<1x4xf32>
    %11 = vector.broadcast %9 : vector<16x1xf32> to vector<16x4xf32>
    %12 = vector.broadcast %10 : vector<1x4xf32> to vector<16x4xf32>
    %13 = arith.mulf %11, %12 : vector<16x4xf32>
    %14 = tpu.concatenate %3, %13 in 1 : vector<16x4xf32>, vector<16x4xf32> -> vector<16x8xf32>
    %c0_7 = arith.constant 0 : index
    %c0_8 = arith.constant 0 : index
    %15 = vector.load %arg4[%c0_7, %c0_8] : memref<16x8xf32, #tpu.memory_space<vmem>>, vector<16x8xf32>
    tpu.vector_store %arg4[%c0_7, %c0_8], %14 {strides = array<i32>} : memref<16x8xf32, #tpu.memory_space<vmem>>, vector<16x8xf32>,
    return
  }
  func.func @transform_0(%arg0: i32) -> (i32, i32) {
    %c0_i32 = arith.constant 0 : i32
    %c0_i32_0 = arith.constant 0 : i32
    return %arg0, %c0_i32 : i32, i32
  }
  func.func @transform_1(%arg0: i32) -> (i32, i32) {
    %c0_i32 = arith.constant 0 : i32
    %c0_i32_0 = arith.constant 0 : i32
    %c0_i32_1 = arith.constant 0 : i32
    return %c0_i32, %c0_i32_0 : i32, i32
  }
  func.func @transform_2(%arg0: i32) -> (i32, i32) {
    %c0_i32 = arith.constant 0 : i32
    %c0_i32_0 = arith.constant 0 : i32
    %c0_i32_1 = arith.constant 0 : i32
    return %c0_i32, %c0_i32_0 : i32, i32
  }
  func.func @transform_3(%arg0: i32) -> (i32, i32) {
    %c0_i32 = arith.constant 0 : i32
    %c0_i32_0 = arith.constant 0 : i32
    return %arg0, %c0_i32 : i32, i32
  }
}

</mosaic_0001>

<bundles_post_ra>
// kernel: tpu_custom_call.1
= control target key start
LH: loop header
LB: loop body
LE: loop exit
PB: predicated region body
PF: predicated region fallthrough
CT: control target
= control target key end

     0   :  { %vm17_vm0 = vcmask 64512   ;;  %s162_s18 = smov 4   ;;  %vm140_vm1 = vcmask 31744   ;;  %s208_s1 = inlined_call_operand.vmem [shape: f32[8,12], index: 1, kind: input, shape index: {}]   ;;  %s209_s0 = inlined_call_operand.vmem [shape: f32[16,8], index: 0, kind: input, shape index: {}]   ;;  %s210_s2 = inlined_call_operand.vmem [shape: f32[1,4], index: 2, kind: input, shape index: {}]   ;;  %s211_s3 = inlined_call_operand.vmem [shape: f32[16,8], index: 3, kind: output, shape index: {}]  }
   0x1   :  { %v16_v0 = vld [vmem:[%s208_s1] sm:$0xff]  ;;  %v15_v2 = vld [vmem:[%s209_s0 + $0x8] sm:$0xff]  ;;  %s163_s1 = smov 124  }
   0x2   :  { %v14_v1 = vld [vmem:[%s209_s0] sm:$0xff]  ;;  %155 = vmatprep.subr.mxu0 %v16_v0 }
   0x3   :  { %157 = vmatprep.mubr.msk.f32.mxu0 %vm17_vm0, %v14_v1  ;;  %156 = vmatpush3.msra.mxu0 %v16_v0  ;;  %v151_v13 = vld [vmem:[%s210_s2] ss:$0 sm:$0xff] }
   0x4   :  { %99 = vrot.lane.b32.xlu0 %v14_v1, %s162_s18  ;;  %158 = vmatmul.mubr.msk.f32.vlgmr.msra.gmra.mrb[0].mxu0 %vm17_vm0, %v15_v2 }
   0x8   :  { %101 = vrot.lane.b32.xlu0 %v15_v2, %s162_s18 }
  0x76   :  { %v100_v3 = vpop.permute.xlu0 %99 }
  0x7a   :  { %v102_v7 = vpop.permute.xlu0 %101 }
  0xd7   :  { %v159_v4 = vpop.f32.mrb[0].mxu0 }
  0xd8   :  { %v90_v5 = vpop.f32.mrb[1].mxu0  ;;  %v106_v8 = vmul.f32 %v159_v4, %v102_v7 }
  0xd9   :  { %v105_v6 = vmul.f32 %v100_v3, %v90_v5 }
  0xdb   :  { %109 = vrot.lane.b32.xlu1 %v105_v6, %s163_s1 }
  0xdf   :  { %111 = vrot.lane.b32.xlu1 %v106_v8, %s163_s1 }
 0x14d   :  { %v110_v9 = vpop.permute.xlu1 %109 }
 0x14e   :  { %v115_v10 = vsel %vm17_vm0, %v110_v9, 0.0 }
 0x14f   :  { %116 = vadd.xlane.f32.xlu0 %v115_v10 }
 0x151   :  { %v112_v11 = vpop.permute.xlu1 %111 }
 0x152   :  { %v118_v12 = vsel %vm17_vm0, %v112_v11, 0.0 }
 0x153   :  { %119 = vadd.xlane.f32.xlu1 %v118_v12 }
 0x1dc   :  { %v117_v14 = vpop.xlane.xlu0 %116 }
 0x1dd   :  { %v121_v15 = vadd.f32 1.0, %v117_v14 }
 0x1df   :  { %v130_v16 = vmul.f32 %v151_v13, %v121_v15 }
 0x1e0   :  { %v120_v17 = vpop.xlane.xlu1 %119 }
 0x1e1   :  { %v122_v18 = vadd.f32 1.0, %v120_v17  ;;  %134 = vrot.lane.b32.xlu0 %v130_v16, %s162_s18 }
 0x1e3   :  { %v131_v19 = vmul.f32 %v151_v13, %v122_v18 }
 0x1e5   :  { %136 = vrot.lane.b32.xlu1 %v131_v19, %s162_s18 }
 0x253   :  { %v135_v20 = vpop.permute.xlu0 %134 }
 0x254   :  { %v141_v21 = vsel %vm140_vm1, %v90_v5, %v135_v20 }
 0x255   :  { %143 = vst.msk [vmem:[%s211_s3] sm:$0xff] %vm17_vm0, %v141_v21 }
 0x257   :  { %v137_v22 = vpop.permute.xlu1 %136 }
 0x258   :  { %v142_v23 = vsel %vm140_vm1, %v159_v4, %v137_v22 }
 0x259   :  { %144 = vst.msk [vmem:[%s211_s3 + $0x8] sm:$0xff] %vm17_vm0, %v142_v23 }

</bundles_post_ra>
